<compile_context>
chip_gen: v7x
topology: tpu7x:2x2x1
jax: 0.10.0
libtpu: 0.0.40
codegen_flags: <defaults>
</compile_context>

<pallas_src>
import jax
import jax.numpy as jnp
from jax.experimental import pallas as pl
from jax.experimental.pallas import tpu as pltpu


def _round_up(n, m):
    return ((n + m - 1) // m) * m


def _head(pooled, w_enc_ref, b_enc_ref, w_fc_ref, b_fc_ref, out_ref):
    """Encoder projection + GE2E head: Linear->tanh, fc->ReLU->L2-normalize."""
    # Cast activations to the (bf16) weight dtype so both matmuls run at the
    # MXU's bf16 rate; accumulation stays f32 via preferred_element_type.
    h = jnp.dot(pooled.astype(w_enc_ref.dtype), w_enc_ref[...],
                preferred_element_type=jnp.float32)
    h = jnp.tanh(h + b_enc_ref[...])                              # [TB, Hp]

    e = jnp.dot(h.astype(w_fc_ref.dtype), w_fc_ref[...],
                preferred_element_type=jnp.float32)
    e = jnp.maximum(e + b_fc_ref[...], 0.0)                       # ReLU

    ssq = jnp.sum(e * e, axis=-1, keepdims=True)                  # [TB, 1]
    # F.normalize: x / max(||x||, 1e-12) == x * rsqrt(max(||x||^2, 1e-24))
    inv = jax.lax.rsqrt(jnp.maximum(ssq, 1e-24))
    out_ref[...] = (e * inv).astype(out_ref.dtype)


def ge2e_single_pass_kernel(len_ref, x_ref, w_enc_ref, b_enc_ref,
                            w_fc_ref, b_fc_ref, out_ref):
    """Whole (padded) time axis resident in one VMEM block; grid = (nb,)."""
    TB, TT, _ = x_ref.shape
    lengths = len_ref[...]                                        # [TB, 1] f32
    x = x_ref[...].astype(jnp.float32)                            # [TB, TT, Dp]

    t_idx = jax.lax.broadcasted_iota(jnp.int32, (TB, TT), 1)
    mask = (t_idx.astype(jnp.float32) < lengths).astype(jnp.float32)
    pooled = jnp.sum(x * mask[:, :, None], axis=1) / jnp.maximum(lengths, 1.0)

    _head(pooled, w_enc_ref, b_enc_ref, w_fc_ref, b_fc_ref, out_ref)


def ge2e_streaming_kernel(max_len_ref, last_tile_ref,                # SMEM prefetch
                          len_ref, x_ref, w_enc_ref, b_enc_ref,
                          w_fc_ref, b_fc_ref, out_ref, acc_ref):
    """Time-streamed masked-mean reduction; grid = (nb, nt), t is 'arbitrary'."""
    b = pl.program_id(0)
    t = pl.program_id(1)
    nt = pl.num_programs(1)
    TB, TT, _ = x_ref.shape

    # ---- init accumulator at the start of the time reduction ---------------
    @pl.when(t == 0)
    def _init():
        acc_ref[...] = jnp.zeros_like(acc_ref)

    # ---- masked partial sum over this time tile -----------------------------
    # The x index_map clamps the time block index for fully-masked tiles, so
    # Pallas never fetches them from HBM; this guard keeps the stale
    # (re-presented) block out of the accumulation.
    @pl.when(t * TT < max_len_ref[b])
    def _accumulate():
        x = x_ref[...].astype(jnp.float32)                        # [TB, TT, Dp]
        lengths = len_ref[...]                                    # [TB, 1] f32
        t_idx = t * TT + jax.lax.broadcasted_iota(jnp.int32, (TB, TT), 1)
        mask = (t_idx.astype(jnp.float32) < lengths).astype(jnp.float32)
        acc_ref[...] += jnp.sum(x * mask[:, :, None], axis=1)     # [TB, Dp]

    # ---- epilogue: encoder projection + GE2E head ---------------------------
    @pl.when(t == nt - 1)
    def _finalize():
        lengths = len_ref[...]
        pooled = acc_ref[...] / jnp.maximum(lengths, 1.0)         # masked mean
        _head(pooled, w_enc_ref, b_enc_ref, w_fc_ref, b_fc_ref, out_ref)


def ge2e_forward(x, lengths, w_enc, b_enc, w_fc, b_fc, *,
                 tb=None, tt=None,
                 stream_dtype=jnp.bfloat16, weight_dtype=jnp.bfloat16,
                 force_streaming=False):
    """x: [B, T, D], lengths: [B] -> ([B, H] float32 embeddings, lengths)."""
    B, T, D = x.shape
    H = w_fc.shape[0]

    Dp = _round_up(D, 128)                  # lane-dense feature dim
    Hp = _round_up(H, 128)                  # lane-dense hidden/output dim

    x_item = jnp.dtype(stream_dtype).itemsize if stream_dtype is not None \
        else jnp.dtype(x.dtype).itemsize
    w_item = jnp.dtype(weight_dtype).itemsize
    t_sub = 16 if x_item < 4 else 8         # bf16 packs [16,128] per vreg

    # ---- per-generation VMEM budget -----------------------------------------
    try:
        vmem_cap = int(pltpu.get_tpu_info().vmem_capacity_bytes)
    except Exception:
        vmem_cap = 64 * 2**20               # conservative (v7x per-core size)
    # <= ~40 MiB on v7x (64 MiB physical), <= 64 MiB on v5e/v6e (128 MiB).
    vmem_budget = min(vmem_cap * 5 // 8, 64 * 2**20)

    # ---- batch tile ----------------------------------------------------------
    if tb is None:
        tb = min(_round_up(B, 8), 256)
        if B > 8:
            # Keep >= 2 batch tiles so the "parallel" axis can shard across
            # v7x's two TensorCores (harmless on single-TC v5e/v6e).
            tb = min(tb, _round_up(-(-B // 2), 8))
    Bp = _round_up(B, tb)
    nb = Bp // tb

    # ---- time tile (sized against the VMEM budget) --------------------------
    Tp_min = _round_up(T, t_sub)
    x_row_bytes = tb * Dp * x_item          # one time step of one batch tile
    # Everything that is not the streamed x: weights/biases (double-buffered
    # allocation, DMA'd once since their block index is constant), lengths
    # column, output block, f32 accumulator scratch.
    fixed_vmem = (2 * (Dp * Hp + Hp * Hp) * w_item    # w_enc, w_fc
                  + 4 * 8 * Hp * 4                    # b_enc, b_fc (sublane pad)
                  + 2 * tb * 128 * 4                  # lengths column (lane pad)
                  + 2 * tb * Hp * 4                   # output block
                  + tb * Dp * 4)                      # accumulator scratch
    if tt is None:
        target_block = 2 * 2**20            # ~2 MiB x block (1-4 MiB sweet spot)
        budget_rows = max((vmem_budget - fixed_vmem) // (2 * x_row_bytes), t_sub)
        tt = min(max(target_block // x_row_bytes, t_sub), budget_rows, 1024)
        tt = max((tt // t_sub) * t_sub, t_sub)
    else:
        tt = _round_up(tt, t_sub)
    tt = min(tt, Tp_min)

    single_pass = (not force_streaming) and (tt == Tp_min)
    if single_pass:
        Tp, nt = Tp_min, 1
        tt = Tp_min
    else:
        Tp = _round_up(T, tt)
        nt = Tp // tt

    # ---- pad + cast inputs (zero padding is exact: padded feature columns /
    # hidden units contribute 0, padded frames are masked, padded rows sliced) -
    x_c = x.astype(stream_dtype) if stream_dtype is not None else x
    x_p = jnp.pad(x_c, ((0, Bp - B), (0, Tp - T), (0, Dp - D)))
    len_col = jnp.pad(lengths.astype(jnp.float32), (0, Bp - B)).reshape(Bp, 1)
    w_enc_p = jnp.pad(w_enc, ((0, Dp - D), (0, Hp - H))).astype(weight_dtype)
    b_enc_p = jnp.pad(b_enc.astype(jnp.float32), (0, Hp - H)).reshape(1, Hp)
    w_fc_p = jnp.pad(w_fc, ((0, Hp - H), (0, Hp - H))).astype(weight_dtype)
    b_fc_p = jnp.pad(b_fc.astype(jnp.float32), (0, Hp - H)).reshape(1, Hp)

    # ---- accurate VMEM request (+25% headroom), clamped to the budget -------
    x_block_bytes = tb * tt * Dp * x_item
    est = fixed_vmem + 2 * x_block_bytes
    vmem_limit = int(min(max(int(est * 1.25), 8 * 2**20), vmem_budget))

    if single_pass:
        grid_spec = pltpu.PrefetchScalarGridSpec(
            num_scalar_prefetch=0,
            grid=(nb,),
            in_specs=[
                pl.BlockSpec((tb, 1), lambda b: (b, 0)),            # lengths
                pl.BlockSpec((tb, Tp, Dp), lambda b: (b, 0, 0)),    # x (whole T)
                pl.BlockSpec((Dp, Hp), lambda b: (0, 0)),           # w_enc
                pl.BlockSpec((1, Hp), lambda b: (0, 0)),            # b_enc
                pl.BlockSpec((Hp, Hp), lambda b: (0, 0)),           # w_fc
                pl.BlockSpec((1, Hp), lambda b: (0, 0)),            # b_fc
            ],
            out_specs=pl.BlockSpec((tb, Hp), lambda b: (b, 0)),
        )
        out = pl.pallas_call(
            ge2e_single_pass_kernel,
            out_shape=jax.ShapeDtypeStruct((Bp, Hp), jnp.float32),
            grid_spec=grid_spec,
            compiler_params=pltpu.CompilerParams(
                dimension_semantics=("parallel",),
                vmem_limit_bytes=vmem_limit),
        )(len_col, x_p, w_enc_p, b_enc_p, w_fc_p, b_fc_p)
    else:
        # Per-batch-tile max length (compute guard) and last needed time-tile
        # index (DMA skip), both scalar-prefetched into SMEM.
        max_len = jnp.ceil(jnp.max(len_col.reshape(nb, tb), axis=1)).astype(jnp.int32)
        last_tile = jnp.maximum((max_len + tt - 1) // tt - 1, 0).astype(jnp.int32)

        grid_spec = pltpu.PrefetchScalarGridSpec(
            num_scalar_prefetch=2,
            grid=(nb, nt),
            in_specs=[
                pl.BlockSpec((tb, 1), lambda b, t, ml, lt: (b, 0)),   # lengths
                # Clamp the time block index: fully-masked tiles re-present the
                # previous block, so Pallas elides the HBM fetch entirely.
                pl.BlockSpec((tb, tt, Dp),
                             lambda b, t, ml, lt: (b, jnp.minimum(t, lt[b]), 0)),
                pl.BlockSpec((Dp, Hp), lambda b, t, ml, lt: (0, 0)),  # w_enc
                pl.BlockSpec((1, Hp), lambda b, t, ml, lt: (0, 0)),   # b_enc
                pl.BlockSpec((Hp, Hp), lambda b, t, ml, lt: (0, 0)),  # w_fc
                pl.BlockSpec((1, Hp), lambda b, t, ml, lt: (0, 0)),   # b_fc
            ],
            out_specs=pl.BlockSpec((tb, Hp), lambda b, t, ml, lt: (b, 0)),
            scratch_shapes=[pltpu.VMEM((tb, Dp), jnp.float32)],
        )
        out = pl.pallas_call(
            ge2e_streaming_kernel,
            out_shape=jax.ShapeDtypeStruct((Bp, Hp), jnp.float32),
            grid_spec=grid_spec,
            compiler_params=pltpu.CompilerParams(
                dimension_semantics=("parallel", "arbitrary"),
                vmem_limit_bytes=vmem_limit),
        )(max_len, last_tile, len_col, x_p, w_enc_p, b_enc_p, w_fc_p, b_fc_p)

    # The PyTorch module returns (embeddings, lengths).
    return out[:B, :H], lengths


# TODO(synk): embed_utterance / embed_speaker (sliding-window unfold + mean +
# normalize) are host-side composition of this forward and are not implemented
# as kernels.

if __name__ == "__main__":
    B, T, D_IN, HIDDEN = 16, 32, 40, 64

    key = jax.random.PRNGKey(0)
    k_x, k_we, k_be, k_wf, k_bf = jax.random.split(key, 5)

    x = jax.random.normal(k_x, (B, T, D_IN), dtype=jnp.float32)
    # Second batch tile (rows 8..15) has max length <= 16 so the streaming
    # path's masked-tile DMA skip + compute guard are exercised with tt=16.
    lengths = jnp.array([32, 20, 12, 8, 16, 4, 10, 18,
                         6, 16, 12, 14, 7, 10, 2, 15], dtype=jnp.float32)

    w_enc = 0.1 * jax.random.normal(k_we, (D_IN, HIDDEN), dtype=jnp.float32)
    b_enc = 0.01 * jax.random.normal(k_be, (HIDDEN,), dtype=jnp.float32)
    w_fc = 0.1 * jax.random.normal(k_wf, (HIDDEN, HIDDEN), dtype=jnp.float32)
    b_fc = 0.01 * jax.random.normal(k_bf, (HIDDEN,), dtype=jnp.float32)

    # Pure-JAX reference mirroring the kernel's bf16 rounding (x streamed bf16,
    # weights bf16 on the MXU, all accumulation f32).
    x_r = x.astype(jnp.bfloat16).astype(jnp.float32)
    we_r = w_enc.astype(jnp.bfloat16).astype(jnp.float32)
    wf_r = w_fc.astype(jnp.bfloat16).astype(jnp.float32)
    t_idx = jnp.arange(T, dtype=jnp.float32)[None, :]
    mask = (t_idx < lengths[:, None]).astype(jnp.float32)
    pooled = (jnp.sum(x_r * mask[:, :, None], axis=1)
              / jnp.maximum(lengths[:, None], 1.0))
    h_ref = jnp.tanh(pooled.astype(jnp.bfloat16).astype(jnp.float32) @ we_r + b_enc)
    e_ref = jnp.maximum(h_ref.astype(jnp.bfloat16).astype(jnp.float32) @ wf_r + b_fc, 0.0)
    ref = e_ref / jnp.maximum(
        jnp.sqrt(jnp.sum(e_ref * e_ref, axis=-1, keepdims=True)), 1e-12)

    # Path 1: default config -> single-pass kernel (whole T in one VMEM block).
    emb1, out_lens = ge2e_forward(x, lengths, w_enc, b_enc, w_fc, b_fc)
    emb1 = jax.block_until_ready(emb1)
    assert emb1.shape == (B, HIDDEN)
    assert out_lens.shape == (B,)
    assert jnp.allclose(emb1, ref, atol=2e-3, rtol=2e-3), "single-pass mismatch"

    # Path 2: forced streaming kernel with masked-tile DMA skip.
    emb2, _ = ge2e_forward(x, lengths, w_enc, b_enc, w_fc, b_fc,
                           tt=16, force_streaming=True)
    emb2 = jax.block_until_ready(emb2)
    assert jnp.allclose(emb2, ref, atol=2e-3, rtol=2e-3), "streaming mismatch"

    print("KERNEL_OK")
</pallas_src>

<mosaic_0001>
module attributes {stable_mosaic.version = 11 : i64} {
  func.func @ge2e_single_pass_kernel(%arg0: i32, %arg1: memref<8x1xf32, #tpu.memory_space<vmem>>, %arg2: memref<8x32x128xbf16, #tpu.memory_space<vmem>>, %arg3: memref<128x128xbf16, #tpu.memory_space<vmem>>, %arg4: memref<1x128xf32, #tpu.memory_space<vmem>>, %arg5: memref<128x128xbf16, #tpu.memory_space<vmem>>, %arg6: memref<1x128xf32, #tpu.memory_space<vmem>>, %arg7: memref<8x128xf32, #tpu.memory_space<vmem>>) attributes {dimension_semantics = [#tpu.dimension_semantics<parallel>], iteration_bounds = array<i64: 2>, scalar_prefetch = 0 : i64, scratch_operands = 0 : i64, tpu.core_type = #tpu.core_type<tc>, window_params = [{transform_indices = @transform_0, window_bounds = array<i64: 8, 1>}, {transform_indices = @transform_1, window_bounds = array<i64: 8, 32, 128>}, {pipeline_mode = #tpu.pipeline_mode<synchronous>, transform_indices = @transform_2, window_bounds = array<i64: 128, 128>}, {pipeline_mode = #tpu.pipeline_mode<synchronous>, transform_indices = @transform_3, window_bounds = array<i64: 1, 128>}, {pipeline_mode = #tpu.pipeline_mode<synchronous>, transform_indices = @transform_4, window_bounds = array<i64: 128, 128>}, {pipeline_mode = #tpu.pipeline_mode<synchronous>, transform_indices = @transform_5, window_bounds = array<i64: 1, 128>}, {transform_indices = @transform_6, window_bounds = array<i64: 8, 128>}]} {
    %c0 = arith.constant 0 : index
    %c0_0 = arith.constant 0 : index
    %0 = vector.load %arg1[%c0, %c0_0] : memref<8x1xf32, #tpu.memory_space<vmem>>, vector<8x1xf32>
    %c0_1 = arith.constant 0 : index
    %c0_2 = arith.constant 0 : index
    %c0_3 = arith.constant 0 : index
    %1 = vector.load %arg2[%c0_1, %c0_2, %c0_3] : memref<8x32x128xbf16, #tpu.memory_space<vmem>>, vector<8x32x128xbf16>
    %2 = arith.extf %1 : vector<8x32x128xbf16> to vector<8x32x128xf32>
    %3 = tpu.iota {dimensions = array<i32: 1>} : vector<8x32xi32>
    %4 = arith.sitofp %3 : vector<8x32xi32> to vector<8x32xf32>
    %5 = vector.broadcast %0 : vector<8x1xf32> to vector<8x32xf32>
    %6 = arith.cmpf olt, %4, %5 : vector<8x32xf32>
    %7 = arith.extui %6 : vector<8x32xi1> to vector<8x32xi32>
    %8 = arith.sitofp %7 : vector<8x32xi32> to vector<8x32xf32>
    %9 = vector.shape_cast %8 : vector<8x32xf32> to vector<8x32x1xf32>
    %10 = vector.broadcast %9 : vector<8x32x1xf32> to vector<8x32x128xf32>
    %11 = arith.mulf %2, %10 : vector<8x32x128xf32>
    %cst = arith.constant dense<0.000000e+00> : vector<8x128xf32>
    %12 = vector.multi_reduction <add>, %11, %cst [1] : vector<8x32x128xf32> to vector<8x128xf32>
    %cst_4 = arith.constant 1.000000e+00 : f32
    %13 = vector.broadcast %cst_4 : f32 to vector<8x1xf32>
    %14 = arith.maximumf %0, %13 : vector<8x1xf32>
    %15 = vector.broadcast %14 : vector<8x1xf32> to vector<8x128xf32>
    %16 = arith.divf %12, %15 : vector<8x128xf32>
    %17 = arith.truncf %16 : vector<8x128xf32> to vector<8x128xbf16>
    %c0_5 = arith.constant 0 : index
    %c0_6 = arith.constant 0 : index
    %18 = vector.load %arg3[%c0_5, %c0_6] : memref<128x128xbf16, #tpu.memory_space<vmem>>, vector<128x128xbf16>
    %cst_7 = arith.constant dense<0.000000e+00> : vector<8x128xf32>
    %19 = tpu.matmul %17, %18, %cst_7 {dimension_numbers = #tpu.dot_dimension_numbers<[1], [0], [0], [1], [0, 0, 1, 1], [], []>} : vector<8x128xbf16>, vector<128x128xbf16>, vector<8x128xf32> -> vector<8x128xf32>
    %c0_8 = arith.constant 0 : index
    %c0_9 = arith.constant 0 : index
    %20 = vector.load %arg4[%c0_8, %c0_9] : memref<1x128xf32, #tpu.memory_space<vmem>>, vector<1x128xf32>
    %21 = vector.broadcast %20 : vector<1x128xf32> to vector<8x128xf32>
    %22 = arith.addf %19, %21 : vector<8x128xf32>
    %23 = math.tanh %22 : vector<8x128xf32>
    %24 = arith.truncf %23 : vector<8x128xf32> to vector<8x128xbf16>
    %c0_10 = arith.constant 0 : index
    %c0_11 = arith.constant 0 : index
    %25 = vector.load %arg5[%c0_10, %c0_11] : memref<128x128xbf16, #tpu.memory_space<vmem>>, vector<128x128xbf16>
    %cst_12 = arith.constant dense<0.000000e+00> : vector<8x128xf32>
    %26 = tpu.matmul %24, %25, %cst_12 {dimension_numbers = #tpu.dot_dimension_numbers<[1], [0], [0], [1], [0, 0, 1, 1], [], []>} : vector<8x128xbf16>, vector<128x128xbf16>, vector<8x128xf32> -> vector<8x128xf32>
    %c0_13 = arith.constant 0 : index
    %c0_14 = arith.constant 0 : index
    %27 = vector.load %arg6[%c0_13, %c0_14] : memref<1x128xf32, #tpu.memory_space<vmem>>, vector<1x128xf32>
    %28 = vector.broadcast %27 : vector<1x128xf32> to vector<8x128xf32>
    %29 = arith.addf %26, %28 : vector<8x128xf32>
    %cst_15 = arith.constant 0.000000e+00 : f32
    %30 = vector.broadcast %cst_15 : f32 to vector<8x128xf32>
    %31 = arith.maximumf %29, %30 : vector<8x128xf32>
    %32 = arith.mulf %31, %31 : vector<8x128xf32>
    %cst_16 = arith.constant dense<0.000000e+00> : vector<8xf32>
    %33 = vector.multi_reduction <add>, %32, %cst_16 [1] : vector<8x128xf32> to vector<8xf32>
    %34 = vector.shape_cast %33 : vector<8xf32> to vector<8x1xf32>
    %cst_17 = arith.constant 1.000000e-24 : f32
    %35 = vector.broadcast %cst_17 : f32 to vector<8x1xf32>
    %36 = arith.maximumf %34, %35 : vector<8x1xf32>
    %37 = math.rsqrt %36 : vector<8x1xf32>
    %38 = vector.broadcast %37 : vector<8x1xf32> to vector<8x128xf32>
    %39 = arith.mulf %31, %38 : vector<8x128xf32>
    %c0_18 = arith.constant 0 : index
    %c0_19 = arith.constant 0 : index
    %40 = vector.load %arg7[%c0_18, %c0_19] : memref<8x128xf32, #tpu.memory_space<vmem>>, vector<8x128xf32>
    tpu.vector_store %arg7[%c0_18, %c0_19], %39 {strides = array<i32>} : memref<8x128xf32, #tpu.memory_space<vmem>>, vector<8x128xf32>,
    return
  }
  func.func @transform_0(%arg0: i32) -> (i32, i32) {
    %c0_i32 = arith.constant 0 : i32
    %c0_i32_0 = arith.constant 0 : i32
    return %arg0, %c0_i32 : i32, i32
  }
  func.func @transform_1(%arg0: i32) -> (i32, i32, i32) {
    %c0_i32 = arith.constant 0 : i32
    %c0_i32_0 = arith.constant 0 : i32
    %c0_i32_1 = arith.constant 0 : i32
    return %arg0, %c0_i32, %c0_i32_0 : i32, i32, i32
  }
  func.func @transform_2(%arg0: i32) -> (i32, i32) {
    %c0_i32 = arith.constant 0 : i32
    %c0_i32_0 = arith.constant 0 : i32
    %c0_i32_1 = arith.constant 0 : i32
    return %c0_i32, %c0_i32_0 : i32, i32
  }
  func.func @transform_3(%arg0: i32) -> (i32, i32) {
    %c0_i32 = arith.constant 0 : i32
    %c0_i32_0 = arith.constant 0 : i32
    %c0_i32_1 = arith.constant 0 : i32
    return %c0_i32, %c0_i32_0 : i32, i32
  }
  func.func @transform_4(%arg0: i32) -> (i32, i32) {
    %c0_i32 = arith.constant 0 : i32
    %c0_i32_0 = arith.constant 0 : i32
    %c0_i32_1 = arith.constant 0 : i32
    return %c0_i32, %c0_i32_0 : i32, i32
  }
  func.func @transform_5(%arg0: i32) -> (i32, i32) {
    %c0_i32 = arith.constant 0 : i32
    %c0_i32_0 = arith.constant 0 : i32
    %c0_i32_1 = arith.constant 0 : i32
    return %c0_i32, %c0_i32_0 : i32, i32
  }
  func.func @transform_6(%arg0: i32) -> (i32, i32) {
    %c0_i32 = arith.constant 0 : i32
    %c0_i32_0 = arith.constant 0 : i32
    return %arg0, %c0_i32 : i32, i32
  }
}

</mosaic_0001>

<bundles_post_ra>
// kernel: tpu_custom_call.1
= control target key start
LH: loop header
LB: loop body
LE: loop exit
PB: predicated region body
PF: predicated region fallthrough
CT: control target
= control target key end

     0   :  { %11 = vsyncpa [#allocation3], 0  ;;  %s1895_s0 = inlined_call_operand.vmem [shape: f32[16,1], index: 0, kind: input, shape index: {}]   ;;  %s1896_s1 = inlined_call_operand.hbm [shape: bf16[16,32,128], index: 1, kind: input, shape index: {}]   ;;  %s1897_s2 = inlined_call_operand.hbm [shape: bf16[128,128], index: 2, kind: input, shape index: {}]   ;;  %s1898_s3 = inlined_call_operand.vmem [shape: f32[1,128], index: 3, kind: input, shape index: {}]   ;;  %s1899_s4 = inlined_call_operand.hbm [shape: bf16[128,128], index: 4, kind: input, shape index: {}]   ;;  %s1900_s5 = inlined_call_operand.vmem [shape: f32[1,128], index: 5, kind: input, shape index: {}]   ;;  %s1901_s6 = inlined_call_operand.hbm [shape: f32[16,128], index: 6, kind: output, shape index: {}]  }
   0x1   :  { %13 = vsyncpa [#allocation3 + $0x1], 0 }
   0x2   :  { %14 = vsyncpa [#allocation6], 0 }
   0x3   :  { %15 = vsyncpa [#allocation4], 0 }
   0x4   :  { %17 = vsyncpa [#allocation4 + $0x1], 0  ;;  %s1570_s21 = smov 0   ;;  %s1572_s22 = smov 0  }
   0x5   :  { %s1574_s23 = smov 0   ;;  %s1576_s24 = smov 0  }
   0x6 LB: > { %s1591_s25 = sadd.s32 4294967295, %s1524_s24   ;;  %s1081_s26 = sadd.s32 4294967294, %s1524_s24   ;;  %s1524_s24 = sphi %s1576_s24, %s1921_s24   ;;  %s1520_s23 = sphi %s1574_s23, %s1920_s23   ;;  %s1516_s22 = sphi %s1572_s22, %s1919_s22   ;;  %s1512_s21 = sphi %s1570_s21, %s1918_s21  }
   0x7   : > { %p69_p0 = scmp.ne.s32.totalorder %s1516_s22, %s1512_s21  ;;  %p1902_p1 = scmp.eq.s32.totalorder %s1591_s25, 0 }
   0x8   : > { %p183_p3 = scmp.eq.s32.totalorder %s1081_s26, 1  ;;  %p1082_p5 = scmp.ge.s32.totalorder %s1524_s24, 1 }
   0x9   : > { %p1600_p4 = por %p1902_p1, %p69_p0  ;;  %p190_p7 = scmp.lt.s32.totalorder %s1524_s24, 3 }
   0xa   : > { %p1605_p6 = por %p183_p3, %p69_p0  ;;  %s1526_s30 = smov [#allocation5]  }
   0xb   : > { %s1905_s27 = scalar_select %p1600_p4, 1, 0 }
   0xc   : > { %s1906_s28 = scalar_select %p1605_p6, 1, 0 }
   0xd   : > { %p1610_p8 = pnand %p1082_p5, %p190_p7  ;;  %s202_s7 = sshll.u32 %s1526_s30, 4  ;;  %s1614_s7 = int_to_ptr.vmem [resolvable:$true] %s202_s7 }
   0xe   : > { %s1527_s9 = smov [#allocation7]   ;;  %s1368_s13 = scalar_lea.hbm %s1897_s2, 1024 }
   0xf   : > { %p1270_p9 = pneg %p1610_p8  ;;  %s218_s10 = sshll.u32 %s1527_s9, 4  ;;  %s1625_s10 = int_to_ptr.vmem [resolvable:$true] %s218_s10 }
  0x10   : > { %p1369_p12 = scmp.ne.s32.totalorder %s1897_s2, %s1368_s13  ;;  %p1375_p5 = scmp.lt.u32.totalorder %s1368_s13, %s1897_s2 }
  0x11   : > { %p1621_p11 = pnand %p1270_p9, %p1902_p1 }
  0x13   : > { %p1370_p13 = pneg %p1621_p11 }
  0x15   : > { %p1371_p0 = pnand %p1370_p13, %p1369_p12 }
  0x17   : > { %p1372_p3 = pneg %p1371_p0 }
  0x19   : > { %p1377_p7 = pnand %p1375_p5, %p1372_p3 }
  0x1b   : > { %1380 = shalt.err (!%p1377_p7)
}
  0x1c   : > { %s1381_s18 = scalar_lea.vmem %s1614_s7, 1024  ;;  %p1389_p2 = scmp.lt.s32.totalorder %s1614_s7, %s1614_s7 }
  0x1d   : > { %p1382_p9 = scmp.ne.s32.totalorder %s1614_s7, %s1381_s18  ;;  %p1390_p12 = scmp.lt.s32.totalorder %s1381_s18, %s1381_s18 }
  0x1f   : > { %p1384_p10 = pnand %p1382_p9, %p1370_p13  ;;  %p1391_p0 = por %p1390_p12, %p1389_p2 }
  0x21   : > { %p1385_p1 = pneg %p1384_p10 }
  0x23   : > { %p1392_p6 = pnand %p1391_p0, %p1385_p1 }
  0x25   : > { %1395 = shalt.err (!%p1392_p6)
}
  0x26   : > { %s1528_s19 = smov 64   ;;  %s1529_s20 = smov 4  }
  0x27   : > { %1273 = dma.hbm_to_vmem [thread:$0]  (!%p1621_p11), %s1897_s2, 1024, %s1614_s7, [#allocation6], %s1528_s19, %s1528_s19, %s1529_s20  }
  0x28   : > { %s1396_s12 = scalar_lea.hbm %s1899_s4, 1024 }
  0x29   : > { %p1397_p1 = scmp.ne.s32.totalorder %s1899_s4, %s1396_s12  ;;  %p1403_p10 = scmp.lt.u32.totalorder %s1396_s12, %s1899_s4 }
  0x2b   : > { %p1399_p2 = pnand %p1397_p1, %p1370_p13 }
  0x2d   : > { %p1400_p6 = pneg %p1399_p2 }
  0x2f   : > { %p1405_p3 = pnand %p1403_p10, %p1400_p6 }
  0x31   : > { %1408 = shalt.err (!%p1405_p3)
}
  0x32   : > { %s1409_s7 = scalar_lea.vmem %s1625_s10, 1024  ;;  %p1417_p12 = scmp.lt.s32.totalorder %s1625_s10, %s1625_s10 }
  0x33   : > { %p1410_p5 = scmp.ne.s32.totalorder %s1625_s10, %s1409_s7  ;;  %p1418_p0 = scmp.lt.s32.totalorder %s1409_s7, %s1409_s7 }
  0x35   : > { %p1412_p7 = pnand %p1410_p5, %p1370_p13  ;;  %p1419_p1 = por %p1418_p0, %p1417_p12 }
  0x37   : > { %p1413_p9 = pneg %p1412_p7 }
  0x39   : > { %p1420_p2 = pnand %p1419_p1, %p1413_p9 }
  0x3b   : > { %1423 = shalt.err (!%p1420_p2)
}
  0x3c   : > { %1276 = dma.hbm_to_vmem [thread:$0]  (!%p1621_p11), %s1899_s4, 1024, %s1625_s10, [#allocation6], %s1528_s19, %s1528_s19, %s1529_s20  }
  0x3d   : > { %s1686_s8 = sadd.s32 1, %s1524_s24   ;;  %s56_s26 = sadd.s32 1, %s1520_s23 }
  0x3e   : > { %s53_s30 = ssub.s32 %s1524_s24, %s1686_s8  ;;  %p63_p13 = scmp.ne.s32.totalorder %s1520_s23, %s1516_s22 }
  0x3f   : > { %p54_p6 = scmp.eq.s32.totalorder %s53_s30, 0  ;;  %p64_p10 = scmp.eq.s32.totalorder %s1524_s24, 0 }
  0x40   : > { %p1909_p3 = scmp.eq.s32.totalorder %s1591_s25, 1  ;;  %p1287_p7 = scmp.lt.s32.totalorder %s1524_s24, 2 }
  0x41   : > { %s1702_s11 = scalar_select %p54_p6, %s1520_s23, %s56_s26  }
  0x42   : > { %p1696_p5 = por %p1909_p3, %p63_p13  ;;  %p65_p9 = por %p64_p10, %p63_p13 }
  0x43   : > { %s242_s12 = sand.u32 1, %s1520_s23   ;;  %s1120_s10 = sshll.u32 %s1524_s24, 11 }
  0x44   : > { %s1910_s9 = scalar_select %p1696_p5, 1, 0 }
  0x45   : > { %s1086_s13 = sshll.u32 %s242_s12, 7  ;;  %s1709_s16 = scalar_lea.hbm %s1896_s1, %s1120_s10 }
  0x46   : > { %s246_s7 = scalar_lea.vmem [#allocation2], %s1086_s13  ;;  %p1713_p11 = pnand %p1287_p7, %p65_p9 }
  0x47   : > { %s254_s17 = sshll.u32 %s246_s7, 4  ;;  %s1717_s26 = scalar_lea.sflag [#allocation3], %s242_s12  ;;  %s1711_s17 = int_to_ptr.vmem [resolvable:$true] %s254_s17 }
  0x48   : > { %s1424_s30 = scalar_lea.hbm %s1709_s16, 2048  ;;  %p1426_p0 = pneg %p1713_p11 }
  0x49   : > { %p1425_p12 = scmp.ne.s32.totalorder %s1709_s16, %s1424_s30  ;;  %s1429_s14 = scalar_lea.hbm %s1896_s1, 4096 }
  0x4a   : > { %p1430_p13 = scmp.lt.u32.totalorder %s1709_s16, %s1896_s1  ;;  %p1431_p6 = scmp.lt.u32.totalorder %s1429_s14, %s1424_s30 }
  0x4b   : > { %p1427_p1 = pnand %p1426_p0, %p1425_p12  ;;  %p1433_p3 = scmp.lt.u32.totalorder %s1424_s30, %s1709_s16 }
  0x4c   : > { %p1432_p10 = por %p1431_p6, %p1430_p13 }
  0x4d   : > { %p1428_p2 = pneg %p1427_p1 }
  0x4e   : > { %p1434_p7 = por %p1433_p3, %p1432_p10 }
  0x50   : > { %p1435_p9 = pnand %p1434_p7, %p1428_p2 }
  0x52   : > { %1438 = shalt.err (!%p1435_p9)
}
  0x53   : > { %s1439_s12 = scalar_lea.vmem %s1711_s17, 2048  ;;  %s1530_s13 = smov [#allocation2]  }
  0x54   : > { %p1440_p12 = scmp.ne.s32.totalorder %s1711_s17, %s1439_s12  ;;  %s1444_s10 = sshll.u32 %s1530_s13, 4  ;;  %s1445_s10 = int_to_ptr.vmem [resolvable:$false] %s1444_s10 }
  0x55   : > { %s1446_s15 = scalar_lea.vmem %s1445_s10, 4096  ;;  %p1447_p4 = scmp.lt.s32.totalorder %s1711_s17, %s1445_s10 }
  0x56   : > { %p1442_p1 = pnand %p1440_p12, %p1426_p0  ;;  %p1448_p13 = scmp.lt.s32.totalorder %s1446_s15, %s1439_s12 }
  0x58   : > { %p1443_p5 = pneg %p1442_p1  ;;  %p1449_p6 = por %p1448_p13, %p1447_p4 }
  0x5a   : > { %p1450_p10 = pnand %p1449_p6, %p1443_p5 }
  0x5c   : > { %1453 = shalt.err (!%p1450_p10)
}
  0x5d   : > { %1280 = dma.hbm_to_vmem [thread:$0]  (!%p1713_p11), %s1709_s16, 2048, %s1711_s17, %s1717_s26, %s1528_s19, %s1528_s19, %s1529_s20  }
  0x5e   : > { %266 = sbr.rel (%p1610_p8) target bundleno = 1063 (0x427), region = 44  ;;  %s1751_s30 = sand.u32 (!%p1610_p8), 1, %s1516_s22  }
  0x5f   : > { %s1091_s14 = sshll.u32 (!%p1610_p8), %s1751_s30, 7  ;;  %s269_s7 = scalar_lea.sflag (!%p1610_p8), [#allocation3], %s1751_s30 }
  0x60   : > { %s1755_s12 = scalar_lea.vmem (!%p1610_p8), [#allocation2], %s1091_s14  ;;  %p1912_p4 = scmp.ne.s32.totalorder (!%p1610_p8), %s1905_s27, 0 }
  0x65   : > { %1499 = dma.done.wait (%p1912_p4), %s269_s7, 2048  }
  0x66   : > { %1501 = vsyncadd (%p1912_p4), %s269_s7, 4294965248  ;;  %p1913_p5 = scmp.eq.s32.totalorder %s1591_s25, 0 }
  0x68   : > { %1503 = dma.done.wait (%p1913_p5), [#allocation6], 2048   ;;  %p1914_p8 = pmov %p1913_p5 }
  0x69   : > { %p313_p11 = scmp.lt.s32.totalorder %s1591_s25, 1  ;;  %v1531_v0 = vmov 0   ;;  %v1532_v1 = vmov 0.0   ;;  %v384_v4 = vlaneseq  ;;  %v1332_v25 = vld [vmem:[#allocation5] sm:$0xff]   ;;  %v1333_v27 = vld [vmem:[#allocation5 + $0x8] sm:$0xff]   ;;  %v1334_v28 = vld [vmem:[#allocation5 + $0x10] sm:$0xff]  }
  0x6a   : > { %1505 = vsyncadd (%p1914_p8), [#allocation6], 4294965248  ;;  %1330 = vset.pattern.permute.xlu0 %v1531_v0  ;;  %1331 = vset.pattern.permute.xlu1 %v1531_v0  ;;  %v1335_v29 = vld [vmem:[#allocation5 + $0x18] sm:$0xff]   ;;  %v1336_v30 = vld [vmem:[#allocation5 + $0x20] sm:$0xff]   ;;  %vm1533_vm1 = vmmov 0   ;;  %vm735_vm2 = vcmask 1041409  }
  0x6b   : > { %s314_s29 = scalar_select %p313_p11, %s1591_s25, 1  ;;  %1218 = vmatprep.subr.bf16.mxu0 %v1532_v1  ;;  %1238 = vmatprep.subr.bf16.mxu1 %v1532_v1  ;;  %v385_v5 = vand.u32 127, %v384_v4  ;;  %v396_v6 = vshrl.u32 %v384_v4, 7  ;;  %v1337_v31 = vld [vmem:[#allocation5 + $0x28] sm:$0xff]   ;;  %v1338_v32 = vld [vmem:[#allocation5 + $0x30] sm:$0xff]   ;;  %v1339_v33 = vld [vmem:[#allocation5 + $0x38] sm:$0xff]  }
  0x6c   : > { %1219 = vmatpush3.bf16.msra.mxu0 %v1332_v25  ;;  %1234 = vmatprep.mubr.msk.bf16.mxu0 %vm1533_vm1, %v1532_v1  ;;  %v1340_v34 = vld [vmem:[#allocation7] sm:$0xff]   ;;  %v1341_v35 = vld [vmem:[#allocation7 + $0x8] sm:$0xff]   ;;  %v1342_v36 = vld [vmem:[#allocation7 + $0x10] sm:$0xff]   ;;  %vm738_vm3 = vcmask 1042434   ;;  %vm741_vm4 = vcmask 1043459   ;;  %vm744_vm5 = vcmask 1044484  }
  0x6d   : > { %s1095_s27 = sshll.u32 %s314_s29, 3  ;;  %v386_v7 = vcvt.s32.f32 %v385_v5  ;;  %v416_v8 = vsub.s32 1, %v396_v6  ;;  %v435_v12 = vsub.s32 2, %v396_v6  ;;  %v397_v14 = vsub.s32 0, %v396_v6  ;;  %1220 = vmatprep.subr.bf16.mxu0 %v1532_v1  ;;  %1254 = vmatprep.mubr.msk.bf16.mxu1 %vm1533_vm1, %v1532_v1  ;;  %v1343_v37 = vld [vmem:[#allocation7 + $0x18] sm:$0xff]   ;;  %v1186_v51 = vld [vmem:[%s1755_s12 + $0x10] sm:$0xff]  }
  0x6e   : > { %s316_s16 = scalar_lea.vmem %s1895_s0, %s1095_s27  ;;  %v454_v16 = vsub.s32 3, %v396_v6  ;;  %v473_v18 = vsub.s32 4, %v396_v6  ;;  %v492_v20 = vsub.s32 5, %v396_v6  ;;  %v511_v22 = vsub.s32 6, %v396_v6  ;;  %1239 = vmatpush3.bf16.msra.mxu1 %v1340_v34  ;;  %v1187_v52 = vld [vmem:[%s1755_s12 + $0x18] sm:$0xff]   ;;  %v1188_v55 = vld [vmem:[%s1755_s12 + $0x20] sm:$0xff]  }
  0x6f   : > { %v319_v2 = vld [vmem:[%s316_s16] sm:$0xff]  ;;  %v530_v24 = vsub.s32 7, %v396_v6  ;;  %1240 = vmatprep.subr.bf16.mxu1 %v1532_v1  ;;  %v1131_v53 = vunpack.c.l.bf16 %v1186_v51  ;;  %v1132_v54 = vunpack.c.h.bf16 %v1186_v51  ;;  %v1135_v58 = vunpack.c.l.bf16 %v1187_v52  ;;  %v1189_v60 = vld [vmem:[%s1755_s12 + $0x28] sm:$0xff]   ;;  %s1094_s10 = sshll.u32 %s1751_s30, 3  ;;  %s1116_s15 = sshll.u32 %s1591_s25, 7 }
  0x70   : > { %389 = vperm.xlu0 %1330, %v319_v2   ;;  %v651_v3 = vmax.f32 %v319_v2, 1.0  ;;  %1221 = vmatpush3.bf16.msra.mxu0 %v1333_v27  ;;  %v1139_v59 = vunpack.c.l.bf16 %v1188_v55  ;;  %v1140_v63 = vunpack.c.h.bf16 %v1188_v55  ;;  %v1122_v0 = vld [vmem:[%s1755_s12] sm:$0xff]   ;;  %v1136_v2 = vunpack.c.h.bf16 %v1187_v52  ;;  %s312_s14 = scalar_lea.vmem [#allocation8], %s1094_s10  ;;  %s1851_s27 = scalar_lea.hbm %s1901_s6, %s1116_s15 }
  0x71   : > { %1222 = vmatprep.subr.bf16.mxu0 %v1532_v1  ;;  %v1143_v6 = vunpack.c.l.bf16 %v1189_v60  ;;  %vm747_vm6 = vcmask 1045509   ;;  %vm750_vm7 = vcmask 1046534   ;;  %vm753_vm8 = vcmask 1047559   ;;  %s980_s7 = sshll.u32 %s312_s14, 4  ;;  %s967_s19 = scalar_lea.sflag [#allocation4], %s1751_s30  ;;  %s1853_s7 = int_to_ptr.vmem [resolvable:$true] %s980_s7 }
  0x72   : > { %654 = vperm.xlu1 %1331, %v651_v3   ;;  %1241 = vmatpush3.bf16.msra.mxu1 %v1341_v35  ;;  %s1454_s20 = scalar_lea.vmem %s1853_s7, 128  ;;  %p1915_p2 = scmp.ne.s32.totalorder %s1910_s9, 0 }
  0x73   : > { %1242 = vmatprep.subr.bf16.mxu1 %v1532_v1  ;;  %p1455_p0 = scmp.ne.s32.totalorder %s1853_s7, %s1454_s20  ;;  %s1534_s25 = smov [#allocation8]  }
  0x74   : > { %1223 = vmatpush3.bf16.msra.mxu0 %v1334_v28  ;;  %s1458_s16 = sshll.u32 %s1534_s25, 4  ;;  %s1459_s16 = int_to_ptr.vmem [resolvable:$false] %s1458_s16 }
  0x75   : > { %1224 = vmatprep.subr.bf16.mxu0 %v1532_v1  ;;  %p1456_p3 = pnand %p1455_p0, %p1915_p2  ;;  %s1460_s17 = scalar_lea.vmem %s1459_s16, 256 }
  0x76   : > { %1243 = vmatpush3.bf16.msra.mxu1 %v1342_v36  ;;  %p1461_p9 = scmp.lt.s32.totalorder %s1853_s7, %s1459_s16  ;;  %p1462_p12 = scmp.lt.s32.totalorder %s1460_s17, %s1454_s20 }
  0x77   : > { %1244 = vmatprep.subr.bf16.mxu1 %v1532_v1  ;;  %p1457_p7 = pneg %p1456_p3 }
  0x78   : > { %1225 = vmatpush3.bf16.msra.mxu0 %v1335_v29  ;;  %p1463_p1 = por %p1462_p12, %p1461_p9 }
  0x79   : > { %1226 = vmatprep.subr.bf16.mxu0 %v1532_v1 }
  0x7a   : > { %1245 = vmatpush3.bf16.msra.mxu1 %v1343_v37  ;;  %p1464_p13 = pnand %p1463_p1, %p1457_p7 }
  0x7b   : > { %1246 = vmatprep.subr.bf16.mxu1 %v1532_v1 }
  0x7c   : > { %1227 = vmatpush3.bf16.msra.mxu0 %v1336_v30 }
  0x7d   : > { %1228 = vmatprep.subr.bf16.mxu0 %v1532_v1 }
  0x80   : > { %1229 = vmatpush3.bf16.msra.mxu0 %v1337_v31 }
  0x81   : > { %1230 = vmatprep.subr.bf16.mxu0 %v1532_v1 }
  0x84   : > { %1231 = vmatpush3.bf16.msra.mxu0 %v1338_v32 }
  0x85   : > { %1232 = vmatprep.subr.bf16.mxu0 %v1532_v1 }
  0x88   : > { %1233 = vmatpush3.bf16.msra.mxu0 %v1339_v33 }
  0xef   : > { %v390_v9 = vpop.permute.xlu0 %389 }
  0xf0   : > { %vm392_vm0 = vcmp.lt.f32.partialorder %v386_v7, %v390_v9  ;;  %v1185_v7 = vld [vmem:[%s1755_s12 + $0x8] sm:$0xff]   ;;  %v1124_v9 = vunpack.c.h.bf16 %v1122_v0 }
  0xf1   : > { %v1096_v10 = vsel %vm392_vm0, 1.0, %v1532_v1  ;;  %v1786_v38 = vpop.permute.xlu1 %654  ;;  %v1128_v33 = vunpack.c.h.bf16 %v1185_v7 }
  0xf2   : > { %v417_v11 = vrot.slane %v1096_v10, %v416_v8  ;;  %v436_v13 = vrot.slane %v1096_v10, %v435_v12  ;;  %v398_v15 = vrot.slane %v1096_v10, %v397_v14  ;;  %v455_v17 = vrot.slane %v1096_v10, %v454_v16 }
  0xf3   : > { %v474_v19 = vrot.slane %v1096_v10, %v473_v18  ;;  %v493_v21 = vrot.slane %v1096_v10, %v492_v20  ;;  %v512_v23 = vrot.slane %v1096_v10, %v511_v22  ;;  %v531_v26 = vrot.slane %v1096_v10, %v530_v24 }
  0xf4   : > { %419 = vbcast.lane.b32.xlu0 %v417_v11, 256  ;;  %423 = vbcast.lane.b32.xlu1 %v417_v11, 264  ;;  %v1123_v8 = vunpack.c.l.bf16 %v1122_v0  ;;  %v1144_v10 = vunpack.c.h.bf16 %v1189_v60  ;;  %v656_v37 = vrot.slane %v1786_v38, 1  ;;  %1348 = vrcp.f32 %v1786_v38  ;;  %v1194_v0 = vld [vmem:[%s1755_s12 + $0x50] sm:$0xff]  }
  0xf6   : > { %1350 = vrcp.f32 %v656_v37 }
  0xf8   : > { %438 = vbcast.lane.b32.xlu0 %v436_v13, 256  ;;  %442 = vbcast.lane.b32.xlu1 %v436_v13, 264 }
  0xfc   : > { %400 = vbcast.lane.b32.xlu0 %v398_v15, 256  ;;  %404 = vbcast.lane.b32.xlu1 %v398_v15, 264 }
 0x100   : > { %427 = vbcast.lane.b32.xlu0 %v417_v11, 272  ;;  %457 = vbcast.lane.b32.xlu1 %v455_v17, 256 }
 0x104   : > { %461 = vbcast.lane.b32.xlu0 %v455_v17, 264  ;;  %446 = vbcast.lane.b32.xlu1 %v436_v13, 272 }
 0x108   : > { %476 = vbcast.lane.b32.xlu0 %v474_v19, 256  ;;  %480 = vbcast.lane.b32.xlu1 %v474_v19, 264 }
 0x10c   : > { %408 = vbcast.lane.b32.xlu0 %v398_v15, 272  ;;  %431 = vbcast.lane.b32.xlu1 %v417_v11, 280 }
 0x110   : > { %465 = vbcast.lane.b32.xlu0 %v455_v17, 272  ;;  %495 = vbcast.lane.b32.xlu1 %v493_v21, 256 }
 0x114   : > { %499 = vbcast.lane.b32.xlu0 %v493_v21, 264  ;;  %450 = vbcast.lane.b32.xlu1 %v436_v13, 280 }
 0x118   : > { %484 = vbcast.lane.b32.xlu0 %v474_v19, 272  ;;  %514 = vbcast.lane.b32.xlu1 %v512_v23, 256 }
 0x11c   : > { %518 = vbcast.lane.b32.xlu0 %v512_v23, 264  ;;  %412 = vbcast.lane.b32.xlu1 %v398_v15, 280 }
 0x120   : > { %469 = vbcast.lane.b32.xlu0 %v455_v17, 280  ;;  %503 = vbcast.lane.b32.xlu1 %v493_v21, 272  ;;  %v1127_v17 = vunpack.c.l.bf16 %v1185_v7  ;;  %v661_v7 = vrot.slane %v1786_v38, 6 }
 0x124   : > { %533 = vbcast.lane.b32.xlu0 %v531_v26, 256  ;;  %537 = vbcast.lane.b32.xlu1 %v531_v26, 264 }
 0x128   : > { %488 = vbcast.lane.b32.xlu0 %v474_v19, 280  ;;  %522 = vbcast.lane.b32.xlu1 %v512_v23, 272  ;;  %v1190_v19 = vld [vmem:[%s1755_s12 + $0x30] sm:$0xff]  }
 0x129   : > { %v1148_v24 = vunpack.c.h.bf16 %v1190_v19  ;;  %v1147_v30 = vunpack.c.l.bf16 %v1190_v19 }
 0x12c   : > { %507 = vbcast.lane.b32.xlu0 %v493_v21, 280  ;;  %541 = vbcast.lane.b32.xlu1 %v531_v26, 272  ;;  %v1191_v21 = vld [vmem:[%s1755_s12 + $0x38] sm:$0xff]  }
 0x12d   : > { %v1151_v32 = vunpack.c.l.bf16 %v1191_v21 }
 0x130   : > { %526 = vbcast.lane.b32.xlu0 %v512_v23, 280  ;;  %545 = vbcast.lane.b32.xlu1 %v531_v26, 280 }
 0x166   : > { %v420_v39 = vpop.permute.xlu0 %419  ;;  %v424_v40 = vpop.permute.xlu1 %423 }
 0x167   : > { %v551_v61 = vmul.f32 %v1131_v53, %v420_v39  ;;  %v552_v62 = vmul.f32 %v1132_v54, %v424_v40  ;;  %v1192_v39 = vld [vmem:[%s1755_s12 + $0x40] sm:$0xff]   ;;  %v657_v53 = vrot.slane %v1786_v38, 2  ;;  %v658_v54 = vrot.slane %v1786_v38, 3 }
 0x169   : > { %v588_v11 = vadd.f32 %v552_v62, %v551_v61  ;;  %1352 = vrcp.f32 %v657_v53 }
 0x16a   : > { %v439_v41 = vpop.permute.xlu0 %438  ;;  %v443_v42 = vpop.permute.xlu1 %442  ;;  %1354 = vrcp.f32 %v658_v54 }
 0x16b   : > { %v555_v12 = vmul.f32 %v1139_v59, %v439_v41  ;;  %v556_v13 = vmul.f32 %v1140_v63, %v443_v42  ;;  %v659_v59 = vrot.slane %v1786_v38, 4 }
 0x16d   : > { %v597_v25 = vadd.f32 %v556_v13, %v555_v12  ;;  %1356 = vrcp.f32 %v659_v59 }
 0x16e   : > { %v401_v43 = vpop.permute.xlu0 %400  ;;  %v405_v44 = vpop.permute.xlu1 %404 }
 0x16f   : > { %v547_v22 = vmul.f32 %v1123_v8, %v401_v43  ;;  %v548_v23 = vmul.f32 %v1124_v9, %v405_v44  ;;  %v1152_v44 = vunpack.c.h.bf16 %v1191_v21  ;;  %v1164_v8 = vunpack.c.h.bf16 %v1194_v0  ;;  %v1195_v9 = vld [vmem:[%s1755_s12 + $0x58] sm:$0xff]  }
 0x171   : > { %v579_v35 = vadd.f32 %v548_v23, %v547_v22  ;;  %v1196_v22 = vld [vmem:[%s1755_s12 + $0x60] sm:$0xff]  }
 0x172   : > { %v428_v45 = vpop.permute.xlu0 %427  ;;  %v458_v46 = vpop.permute.xlu1 %457 }
 0x173   : > { %v553_v5 = vmul.f32 %v1135_v58, %v428_v45  ;;  %v559_v45 = vmul.f32 %v1147_v30, %v458_v46 }
 0x175   : > { %v589_v18 = vadd.f32 %v588_v11, %v553_v5 }
 0x176   : > { %v462_v47 = vpop.permute.xlu0 %461  ;;  %v447_v48 = vpop.permute.xlu1 %446 }
 0x177   : > { %v557_v20 = vmul.f32 %v1143_v6, %v447_v48  ;;  %v560_v36 = vmul.f32 %v1148_v24, %v462_v47  ;;  %v1193_v47 = vld [vmem:[%s1755_s12 + $0x48] sm:$0xff]   ;;  %v660_v6 = vrot.slane %v1786_v38, 5  ;;  %v1167_v24 = vunpack.c.l.bf16 %v1195_v9 }
 0x179   : > { %v598_v34 = vadd.f32 %v597_v25, %v557_v20  ;;  %v606_v55 = vadd.f32 %v560_v36, %v559_v45  ;;  %v1160_v25 = vunpack.c.h.bf16 %v1193_v47  ;;  %1358 = vrcp.f32 %v660_v6 }
 0x17a   : > { %v1788_v49 = vpop.permute.xlu0 %476  ;;  %v1790_v50 = vpop.permute.xlu1 %480  ;;  %1360 = vrcp.f32 %v661_v7 }
 0x17e   : > { %v409_v56 = vpop.permute.xlu0 %408  ;;  %v432_v57 = vpop.permute.xlu1 %431 }
 0x17f   : > { %v554_v14 = vmul.f32 %v1136_v2, %v432_v57  ;;  %v549_v31 = vmul.f32 %v1127_v17, %v409_v56  ;;  %v1155_v56 = vunpack.c.l.bf16 %v1192_v39  ;;  %v1156_v57 = vunpack.c.h.bf16 %v1192_v39 }
 0x180   : > { %v1159_v2 = vunpack.c.l.bf16 %v1193_v47  ;;  %v1163_v17 = vunpack.c.l.bf16 %v1194_v0 }
 0x181   : > { %v590_v26 = vadd.f32 %v589_v18, %v554_v14  ;;  %v580_v48 = vadd.f32 %v579_v35, %v549_v31  ;;  %v564_v11 = vmul.f32 %v1156_v57, %v1790_v50  ;;  %v1198_v14 = vld [vmem:[%s1755_s12 + $0x70] sm:$0xff]   ;;  %v1826_v35 = vpop.eup %1348 }
 0x182   : > { %v466_v3 = vpop.permute.xlu0 %465  ;;  %v1797_v4 = vpop.permute.xlu1 %495  ;;  %v1180_v50 = vunpack.c.h.bf16 %v1198_v14 }
 0x183   : > { %v591_v40 = vrot.slane %v590_v26, 4  ;;  %v561_v51 = vmul.f32 %v1151_v32, %v466_v3 }
 0x185   : > { %v592_v46 = vadd.f32 %v591_v40, %v590_v26  ;;  %v607_v63 = vadd.f32 %v606_v55, %v561_v51  ;;  %v1179_v26 = vunpack.c.l.bf16 %v1198_v14  ;;  %v1351_v51 = vpop.eup %1350 }
 0x186   : > { %v1800_v15 = vpop.permute.xlu0 %499  ;;  %v451_v16 = vpop.permute.xlu1 %450 }
 0x187   : > { %v558_v27 = vmul.f32 %v1144_v10, %v451_v16  ;;  %v563_v10 = vmul.f32 %v1155_v56, %v1788_v49  ;;  %v593_v16 = vrot.slane %v592_v46, 2  ;;  %v1172_v49 = vunpack.c.h.bf16 %v1196_v22 }
 0x188   : > { %v568_v30 = vmul.f32 %v1164_v8, %v1800_v15 }
 0x189   : > { %v599_v41 = vadd.f32 %v598_v34, %v558_v27  ;;  %v615_v27 = vadd.f32 %v564_v11, %v563_v10  ;;  %v1199_v34 = vld [vmem:[%s1755_s12 + $0x78] sm:$0xff]   ;;  %v594_v36 = vadd.f32 %v593_v16, %v592_v46 }
 0x18a   : > { %v485_v28 = vpop.permute.xlu0 %484  ;;  %v1804_v29 = vpop.permute.xlu1 %514  ;;  %v1183_v53 = vunpack.c.l.bf16 %v1199_v34  ;;  %v1184_v11 = vunpack.c.h.bf16 %v1199_v34 }
 0x18b   : > { %v600_v60 = vrot.slane %v599_v41, 4  ;;  %v565_v21 = vmul.f32 %v1159_v2, %v485_v28  ;;  %v567_v28 = vmul.f32 %v1163_v17, %v1797_v4  ;;  %v595_v0 = vrot.slane %v594_v36, 1 }
 0x18d   : > { %v601_v18 = vadd.f32 %v600_v60, %v599_v41  ;;  %v1168_v41 = vunpack.c.h.bf16 %v1195_v9  ;;  %v624_v47 = vadd.f32 %v568_v30, %v567_v28 }
 0x18e   : > { %v1808_v42 = vpop.permute.xlu0 %518  ;;  %v413_v43 = vpop.permute.xlu1 %412 }
 0x18f   : > { %v550_v52 = vmul.f32 %v1128_v33, %v413_v43  ;;  %v1197_v33 = vld [vmem:[%s1755_s12 + $0x68] sm:$0xff]   ;;  %v602_v37 = vrot.slane %v601_v18, 2  ;;  %v616_v43 = vadd.f32 %v615_v27, %v565_v21  ;;  %v572_v4 = vmul.f32 %v1172_v49, %v1808_v42 }
 0x190   : > { %v1175_v15 = vunpack.c.l.bf16 %v1197_v33  ;;  %v1176_v54 = vunpack.c.h.bf16 %v1197_v33  ;;  %v662_v42 = vrot.slane %v1786_v38, 7 }
 0x191   : > { %v581_v58 = vadd.f32 %v580_v48, %v550_v52  ;;  %v1171_v52 = vunpack.c.l.bf16 %v1196_v22  ;;  %v603_v59 = vadd.f32 %v602_v37, %v601_v18 }
 0x192   : > { %v470_v61 = vpop.permute.xlu0 %469  ;;  %v504_v62 = vpop.permute.xlu1 %503  ;;  %1362 = vrcp.f32 %v662_v42 }
 0x193   : > { %v582_v3 = vrot.slane %v581_v58, 4  ;;  %v562_v5 = vmul.f32 %v1152_v44, %v470_v61  ;;  %v569_v45 = vmul.f32 %v1167_v24, %v504_v62  ;;  %v571_v8 = vmul.f32 %v1171_v52, %v1804_v29 }
 0x194   : > { %v604_v18 = vrot.slane %v603_v59, 1 }
 0x195   : > { %v583_v12 = vadd.f32 %v582_v3, %v581_v58  ;;  %v608_v13 = vadd.f32 %v607_v63, %v562_v5  ;;  %v1353_v58 = vpop.eup %1352  ;;  %v625_v62 = vadd.f32 %v624_v47, %v569_v45 }
 0x196   : > { %v534_v19 = vpop.permute.xlu0 %533  ;;  %v538_v20 = vpop.permute.xlu1 %537  ;;  %v605_v33 = vadd.f32 %v604_v18, %v603_v59 }
 0x197   : > { %v609_v23 = vrot.slane %v608_v13, 4  ;;  %v584_v31 = vrot.slane %v583_v12, 2  ;;  %v575_v46 = vmul.f32 %v1179_v26, %v534_v19  ;;  %v576_v60 = vmul.f32 %v1180_v50, %v538_v20  ;;  %v1355_v5 = vpop.eup %1354 }
 0x198   : > { %v1357_v17 = vpop.eup %1356  ;;  %v633_v19 = vadd.f32 %v572_v4, %v571_v8 }
 0x199   : > { %v610_v32 = vadd.f32 %v609_v23, %v608_v13  ;;  %v585_v55 = vadd.f32 %v584_v31, %v583_v12  ;;  %v642_v20 = vadd.f32 %v576_v60, %v575_v46  ;;  %v596_v23 = vadd.f32 %v595_v0, %v594_v36  ;;  %v1359_v7 = vpop.eup %1358 }
 0x19a   : > { %v489_v39 = vpop.permute.xlu0 %488  ;;  %v523_v40 = vpop.permute.xlu1 %522 }
 0x19b   : > { %v611_v44 = vrot.slane %v610_v32, 2  ;;  %v566_v48 = vmul.f32 %v1160_v25, %v489_v39  ;;  %v573_v9 = vmul.f32 %v1175_v15, %v523_v40  ;;  %v586_v12 = vrot.slane %v585_v55, 1 }
 0x19c   : > { %v674_v37 = vmul.f32 %v1351_v51, %v596_v23 }
 0x19d   : > { %v612_v56 = vadd.f32 %v611_v44, %v610_v32  ;;  %v617_v57 = vadd.f32 %v616_v43, %v566_v48  ;;  %v634_v25 = vadd.f32 %v633_v19, %v573_v9  ;;  %v587_v27 = vadd.f32 %v586_v12, %v585_v55 }
 0x19e   : > { %v508_v61 = vpop.permute.xlu0 %507  ;;  %v542_v63 = vpop.permute.xlu1 %541  ;;  %v676_v48 = vmul.f32 %v1353_v58, %v605_v33  ;;  %v1344_v33 = vld [vmem:[#allocation7 + $0x20] sm:$0xff]  }
 0x19f   : > { %v618_v2 = vrot.slane %v617_v57, 4  ;;  %v570_v3 = vmul.f32 %v1168_v41, %v508_v61  ;;  %v577_v10 = vmul.f32 %v1183_v53, %v542_v63  ;;  %v613_v13 = vrot.slane %v612_v56, 1  ;;  %v1361_v58 = vpop.eup %1360  ;;  %1247 = vmatpush3.bf16.msra.mxu1 %v1344_v33 }
 0x1a0   : > { %v672_v41 = vmul.f32 %v1826_v35, %v587_v27  ;;  %v688_v53 = vpack.c.bf16 %v674_v37, %v674_v37  ;;  %v689_v59 = vpack.c.bf16 %v676_v48, %v676_v48  ;;  %1248 = vmatprep.subr.bf16.mxu1 %v1532_v1  ;;  %v1347_v37 = vld [vmem:[#allocation7 + $0x38] sm:$0xff]  }
 0x1a1   : > { %v619_v14 = vadd.f32 %v618_v2, %v617_v57  ;;  %v626_v16 = vadd.f32 %v625_v62, %v570_v3  ;;  %v643_v49 = vadd.f32 %v642_v20, %v577_v10  ;;  %v614_v30 = vadd.f32 %v613_v13, %v612_v56 }
 0x1a2   : > { %v527_v21 = vpop.permute.xlu0 %526  ;;  %v546_v22 = vpop.permute.xlu1 %545  ;;  %v687_v51 = vpack.c.bf16 %v672_v41, %v672_v41  ;;  %v727_v35 = vunpack.c.l.b16 %v688_v53  ;;  %v728_v8 = vunpack.c.l.b16 %v689_v59 }
 0x1a3   : > { %v620_v29 = vrot.slane %v619_v14, 2  ;;  %v627_v24 = vrot.slane %v626_v16, 4  ;;  %v574_v26 = vmul.f32 %v1176_v54, %v527_v21  ;;  %v578_v50 = vmul.f32 %v1184_v11, %v546_v22 }
 0x1a4   : > { %v678_v43 = vmul.f32 %v1355_v5, %v614_v30  ;;  %v726_v62 = vunpack.c.l.b16 %v687_v51  ;;  %v1363_v5 = vpop.eup %1362  ;;  %v734_v12 = vrot.slane %v727_v35, 7  ;;  %v737_v18 = vrot.slane %v728_v8, 6 }
 0x1a5   : > { %v621_v31 = vadd.f32 %v620_v29, %v619_v14  ;;  %v628_v32 = vadd.f32 %v627_v24, %v626_v16  ;;  %v635_v34 = vadd.f32 %v634_v25, %v574_v26  ;;  %v644_v28 = vadd.f32 %v643_v49, %v578_v50 }
 0x1a6   : > { %v690_v56 = vpack.c.bf16 %v678_v43, %v678_v43 }
 0x1a7   : > { %v622_v39 = vrot.slane %v621_v31, 1  ;;  %v629_v6 = vrot.slane %v628_v32, 2  ;;  %v636_v36 = vrot.slane %v635_v34, 4  ;;  %v645_v40 = vrot.slane %v644_v28, 4 }
 0x1a8   : > { %v729_v2 = vunpack.c.l.b16 %v690_v56 }
 0x1a9   : > { %v623_v44 = vadd.f32 %v622_v39, %v621_v31  ;;  %v630_v45 = vadd.f32 %v629_v6, %v628_v32  ;;  %v637_v52 = vadd.f32 %v636_v36, %v635_v34  ;;  %v646_v15 = vadd.f32 %v645_v40, %v644_v28  ;;  %v1345_v34 = vld [vmem:[#allocation7 + $0x28] sm:$0xff]   ;;  %v1346_v28 = vld [vmem:[#allocation7 + $0x30] sm:$0xff]   ;;  %v1097_v39 = vld [vmem:[%s1898_s3] ss:$0 sm:$0xff] }
 0x1aa   : > { %v740_v42 = vrot.slane %v729_v2, 5  ;;  %1249 = vmatpush3.bf16.msra.mxu1 %v1345_v34 }
 0x1ab   : > { %v680_v54 = vmul.f32 %v1357_v17, %v623_v44  ;;  %v631_v47 = vrot.slane %v630_v45, 1  ;;  %v638_v55 = vrot.slane %v637_v52, 2  ;;  %v647_v38 = vrot.slane %v646_v15, 2  ;;  %1250 = vmatprep.subr.bf16.mxu1 %v1532_v1 }
 0x1ac   : > { %v736_v17 = vsel %vm735_vm2, %v734_v12, %v726_v62 }
 0x1ad   : > { %v632_v57 = vadd.f32 %v631_v47, %v630_v45  ;;  %v691_v4 = vpack.c.bf16 %v680_v54, %v680_v54  ;;  %v639_v46 = vadd.f32 %v638_v55, %v637_v52  ;;  %v648_v60 = vadd.f32 %v647_v38, %v646_v15 }
 0x1ae   : > { %v739_v24 = vsel %vm738_vm3, %v737_v18, %v736_v17  ;;  %1251 = vmatpush3.bf16.msra.mxu1 %v1346_v28 }
 0x1af   : > { %v682_v61 = vmul.f32 %v1359_v7, %v632_v57  ;;  %v640_v63 = vrot.slane %v639_v46, 1  ;;  %v649_v0 = vrot.slane %v648_v60, 1  ;;  %v730_v9 = vunpack.c.l.b16 %v691_v4  ;;  %1252 = vmatprep.subr.bf16.mxu1 %v1532_v1  ;;  %v1106_v1 = vld [vmem:[%s1900_s5] ss:$0 sm:$0xff] }
 0x1b0   : > { %v742_v25 = vsel %vm741_vm4, %v740_v42, %v739_v24 }
 0x1b1   : > { %v692_v3 = vpack.c.bf16 %v682_v61, %v682_v61  ;;  %v641_v10 = vadd.f32 %v640_v63, %v639_v46  ;;  %v650_v11 = vadd.f32 %v649_v0, %v648_v60  ;;  %v743_v19 = vrot.slane %v730_v9, 4 }
 0x1b2   : > { %1253 = vmatpush3.bf16.msra.mxu1 %v1347_v37 }
 0x1b3   : > { %v731_v13 = vunpack.c.l.b16 %v692_v3  ;;  %v684_v14 = vmul.f32 %v1361_v58, %v641_v10  ;;  %v686_v16 = vmul.f32 %v1363_v5, %v650_v11  ;;  %v745_v49 = vsel %vm744_vm5, %v743_v19, %v742_v25 }
 0x1b5   : > { %v693_v20 = vpack.c.bf16 %v684_v14, %v684_v14  ;;  %v694_v21 = vpack.c.bf16 %v686_v16, %v686_v16  ;;  %v746_v22 = vrot.slane %v731_v13, 3 }
 0x1b7   : > { %v732_v23 = vunpack.c.l.b16 %v693_v20  ;;  %v733_v29 = vunpack.c.l.b16 %v694_v21  ;;  %v748_v27 = vsel %vm747_vm6, %v746_v22, %v745_v49 }
 0x1b9   : > { %v749_v26 = vrot.slane %v732_v23, 2  ;;  %v752_v50 = vrot.slane %v733_v29, 1 }
 0x1bb   : > { %v751_v30 = vsel %vm750_vm7, %v749_v26, %v748_v27 }
 0x1bc   : > { %v754_v31 = vsel %vm753_vm8, %v752_v50, %v751_v30 }
 0x1bd   : > { %v755_v32 = vpack.c.b16 %v754_v31, %v754_v31 }
 0x1bf   : > { %1235 = vmatmul.mubr.bf16.vlgmr.msra.gmra.mrb[0].mxu0 %v755_v32 }
 0x292   : > { %v839_v6 = vpop.f32.mrb[0].mxu0 }
 0x293   : > { %v840_v36 = vadd.f32 %v1097_v39, %v839_v6  ;;  %v1236_v40 = vpop.f32.mrb[1].mxu0 }
 0x294   : > { %v842_v41 = vpop.f32.mrb[2].mxu0 }
 0x295   : > { %1364 = vtanh.f32 %v840_v36  ;;  %v1237_v43 = vpop.f32.mrb[3].mxu0 }
 0x29f   : > { %v1365_v44 = vpop.eup %1364 }
 0x2a0   : > { %v846_v45 = vpack.c.bf16 %v1365_v44, %v1365_v44 }
 0x2a2   : > { %1255 = vmatmul.mubr.bf16.vlgmr.msra.gmra.mrb[0].mxu1 %v846_v45 }
 0x375   : > { %v952_v48 = vpop.f32.mrb[0].mxu1 }
 0x376   : > { %v953_v52 = vadd.f32 %v1106_v1, %v952_v48  ;;  %v1256_v15 = vpop.f32.mrb[1].mxu1 }
 0x377   : > { %v955_v53 = vpop.f32.mrb[2].mxu1 }
 0x378   : > { %v958_v54 = vmax.f32 %v953_v52, 0.0  ;;  %v1257_v47 = vpop.f32.mrb[3].mxu1 }
 0x37a   : > { %v959_v55 = vmul.f32 %v958_v54, %v958_v54 }
 0x37c   : > { %960 = vadd.xlane.f32.xlu0 %v959_v55 }
 0x409   : > { %v961_v38 = vpop.xlane.xlu0 %960 }
 0x40a   : > { %v962_v7 = vmax.f32 %v961_v38, 1e-24 }
 0x40c   : > { %1366 = vrsqrt.f32 %v962_v7 }
 0x416   : > { %v1367_v51 = vpop.eup %1366 }
 0x417   : > { %v964_v56 = vmul.f32 %v1367_v51, %v958_v54 }
 0x419   : > { %965 = vst [vmem:[%s312_s14] sm:$0xff] %v964_v56 }
 0x41a   : > { %1467 = shalt.err (!%p1464_p13)
}
 0x41b   : > { %s1468_s30 = scalar_lea.hbm %s1851_s27, 128  ;;  %s1472_s13 = scalar_lea.hbm %s1901_s6, 256 }
 0x41c   : > { %p1469_p6 = scmp.ne.s32.totalorder %s1851_s27, %s1468_s30  ;;  %p1473_p5 = scmp.lt.u32.totalorder %s1851_s27, %s1901_s6 }
 0x41d   : > { %p1474_p8 = scmp.lt.u32.totalorder %s1472_s13, %s1468_s30  ;;  %p1476_p0 = scmp.lt.u32.totalorder %s1468_s30, %s1851_s27 }
 0x41e   : > { %p1470_p10 = pnand %p1469_p6, %p1915_p2 }
 0x41f   : > { %p1475_p11 = por %p1474_p8, %p1473_p5 }
 0x420   : > { %p1471_p4 = pneg %p1470_p10 }
 0x421   : > { %p1477_p3 = por %p1476_p0, %p1475_p11 }
 0x423   : > { %p1478_p7 = pnand %p1477_p3, %p1471_p4 }
 0x425   : > { %1481 = shalt.err (!%p1478_p7)
}
 0x426   : > { %1268 = dma.vmem_to_hbm [thread:$0]  (%p1915_p2), %s1853_s7, 128, %s1851_s27, %s967_s19  }
 0x427 PF: > { %s992_s14 = sand.u32 1, %s1512_s21   ;;  %p1916_p9 = scmp.ne.s32.totalorder %s1906_s28, 0 }
 0x428   : > { %p1917_p12 = scmp.ge.s32.totalorder %s1524_s24, 2  ;;  %s993_s12 = scalar_lea.sflag [#allocation4], %s992_s14 }
 0x42a   : > { %p1282_p1 = pnand %p1917_p12, %p1916_p9 }
 0x42c   : > { %1507 = dma.done.wait (!%p1282_p1), %s993_s12, 128  }
 0x42d   : > { %1509 = vsyncadd (!%p1282_p1), %s993_s12, 4294967168  ;;  %p20_p13 = scmp.ge.s32.totalorder %s1686_s8, 4   ;;  %s1918_s21 = smov %s1516_s22 }
 0x42e   : > { %s1919_s22 = smov %s1520_s23  ;;  %s1920_s23 = smov %s1702_s11 }
 0x42f   : > { %s1921_s24 = smov %s1686_s8  ;;  %22 = sbr.rel (!%p20_p13) target bundleno = 6 (0x6), region = 100 }
 0x436   :  { %998 = vsyncpa [#allocation3], 1 }
 0x437   :  { %1000 = vsyncpa [#allocation3 + $0x1], 1 }
 0x438   :  { %1001 = vsyncpa [#allocation6], 1 }
 0x439   :  { %1002 = vsyncpa [#allocation4], 1 }
 0x43a   :  { %1004 = vsyncpa [#allocation4 + $0x1], 1 }

</bundles_post_ra>
